<compile_context>
chip_gen: v6e
topology: v6e:2x2x1
jax: 0.10.0
libtpu: 0.0.40
codegen_flags: <defaults>
</compile_context>

<pallas_src>
import functools

import numpy as np

import jax
import jax.numpy as jnp
from jax.experimental import pallas as pl
from jax.experimental.pallas import tpu as pltpu

LANE = 128

_VMEM_SPEC = pl.BlockSpec(memory_space=pltpu.MemorySpace.VMEM)


def _round_up(v, m):
    return ((v + m - 1) // m) * m


def _pad2(x, rows, cols):
    r, c = x.shape
    return jnp.pad(x, ((0, rows - r), (0, cols - c)))


def _tpu_budget():
    """Return (vmem_limit_bytes, row-tile target) for this TPU generation."""
    vmem_cap = None
    try:
        info = pltpu.get_tpu_info()
        vmem_cap = getattr(info, "vmem_capacity_bytes", None)
    except Exception:
        vmem_cap = None
    if vmem_cap is None:
        try:
            kind = jax.devices()[0].device_kind.lower()
        except Exception:
            kind = ""
        vmem_cap = (128 * 1024 * 1024 if ("v5" in kind or "v6" in kind)
                    else 64 * 1024 * 1024)
    if vmem_cap >= 100 * 1024 * 1024:       # v5e / v6e: 128 MiB physical VMEM
        return 96 * 1024 * 1024, 512
    return 48 * 1024 * 1024, 256            # v7x: 64 MiB per TensorCore


@functools.lru_cache(maxsize=None)
def _single_buffer_ok():
    """Probe whether pipeline_mode=pl.Buffered(buffer_count=1) lowers/runs here."""
    if not hasattr(pl, "Buffered"):
        return False

    def _copy(x_ref, o_ref):
        o_ref[...] = x_ref[...]

    try:
        spec = pl.BlockSpec((8, LANE), lambda i: (0, 0),
                            pipeline_mode=pl.Buffered(buffer_count=1))
        fn = pl.pallas_call(
            _copy,
            out_shape=jax.ShapeDtypeStruct((16, LANE), jnp.float32),
            grid=(2,),
            in_specs=[spec],
            out_specs=pl.BlockSpec((8, LANE), lambda i: (i, 0)),
        )
        jax.block_until_ready(fn(jnp.zeros((8, LANE), jnp.float32)))
        return True
    except Exception:
        return False


def _resident_spec(shape, index_map):
    """Spec for a grid-invariant operand; single-buffered (halves VMEM) if supported."""
    if _single_buffer_ok():
        return pl.BlockSpec(shape, index_map,
                            pipeline_mode=pl.Buffered(buffer_count=1))
    return pl.BlockSpec(shape, index_map)


# ---------------------------------------------------------------------------
# Pallas kernels
# ---------------------------------------------------------------------------
def fused_hop_kernel(*refs, is_first, is_last):
    """One fused TAGConv hop for a row tile.

    With S = D^-1/2 A D^-1/2 applied via binary int8 A + f32 degree scaling
    (hcol_{k-1} = dinv * hop_{k-1} is supplied in scaled-column form):

        t      = A_bin[tile, :] @ hcol_{k-1}           (MXU, f32 accumulation)
        hop_k  = dinv[tile] * t
        hcol_k = dinv[tile] * hop_k                    (feeds the next hop)
        acc_k  = acc_{k-1} + hop_k @ W_k  (+ hop_0 @ W_0 on the first hop)
        out    = relu(acc_K + b)                       (on the last hop)
    """
    if is_first:
        a_ref, hcol_ref, dinv_ref, h0_ref, w0_ref, w_ref = refs[:6]
        rest = refs[6:]
    else:
        a_ref, hcol_ref, dinv_ref, w_ref, acc_in_ref = refs[:5]
        rest = refs[5:]
    if is_last:
        b_ref = rest[0]
        (out_ref,) = rest[1:]
    else:
        hcol_out_ref, acc_out_ref = rest

    # int8 -> bf16 cast is exact for the 0/1 adjacency entries; the MXU matmul
    # accumulates in f32.
    a = a_ref[...].astype(jnp.bfloat16)
    t = jnp.dot(a, hcol_ref[...], preferred_element_type=jnp.float32)   # [TM, C]
    dinv = dinv_ref[...]                                                 # [TM, 1]
    hop = dinv * t                                                       # f32

    acc = jnp.dot(hop.astype(jnp.bfloat16), w_ref[...],
                  preferred_element_type=jnp.float32)
    if is_first:
        acc = acc + jnp.dot(h0_ref[...], w0_ref[...],
                            preferred_element_type=jnp.float32)
    else:
        acc = acc + acc_in_ref[...]

    if is_last:
        acc = acc + b_ref[...]
        out_ref[...] = jnp.maximum(acc, 0.0).astype(out_ref.dtype)
    else:
        hcol_out_ref[...] = (dinv * hop).astype(hcol_out_ref.dtype)
        acc_out_ref[...] = acc


def readout_mlp_kernel(x_ref, wm_ref, bm_ref, w1_ref, b1_ref, w2_ref, b2_ref,
                       o_ref):
    """Merger linear + FeedForwardNetwork (Linear -> ReLU -> Linear)."""
    x = x_ref[...]
    m = jnp.dot(x, wm_ref[...], preferred_element_type=jnp.float32) + bm_ref[...]
    h = jnp.dot(m.astype(jnp.bfloat16), w1_ref[...],
                preferred_element_type=jnp.float32) + b1_ref[...]
    h = jnp.maximum(h, 0.0)
    o = jnp.dot(h.astype(jnp.bfloat16), w2_ref[...],
                preferred_element_type=jnp.float32) + b2_ref[...]
    o_ref[...] = o


# ---------------------------------------------------------------------------
# pallas_call wrappers
# ---------------------------------------------------------------------------
def _fused_hop(a, hcol, dinv, w, *, h0, w0, acc, b, is_first, is_last,
               tm, vmem_limit):
    n_pad = a.shape[0]
    c = hcol.shape[1]
    c_out = w.shape[1]
    grid = (n_pad // tm,)
    row = lambda i: (i, 0)
    const = lambda i: (0, 0)

    inputs = [a, hcol, dinv]
    in_specs = [pl.BlockSpec((tm, n_pad), row),     # int8 A row tile (streamed)
                _resident_spec((n_pad, c), const),   # scaled previous hop (resident)
                pl.BlockSpec((tm, 1), row)]          # d^-1/2 for the tile rows
    if is_first:
        inputs += [h0, w0]
        in_specs += [pl.BlockSpec((tm, c), row),
                     _resident_spec((c, c_out), const)]
    inputs += [w]
    in_specs += [_resident_spec((c, c_out), const)]
    io_aliases = {}
    if not is_first:
        inputs += [acc]
        in_specs += [pl.BlockSpec((tm, c_out), row)]
        if not is_last:
            io_aliases = {len(inputs) - 1: 1}        # accumulate in place
    if is_last:
        inputs += [b]
        in_specs += [_resident_spec((1, c_out), const)]

    if is_last:
        out_shape = jax.ShapeDtypeStruct((n_pad, c_out), jnp.bfloat16)
        out_specs = pl.BlockSpec((tm, c_out), row)
    else:
        out_shape = (jax.ShapeDtypeStruct((n_pad, c), jnp.bfloat16),
                     jax.ShapeDtypeStruct((n_pad, c_out), jnp.float32))
        out_specs = (pl.BlockSpec((tm, c), row),
                     pl.BlockSpec((tm, c_out), row))

    flops = 2 * n_pad * n_pad * c + 2 * n_pad * c * c_out * (2 if is_first else 1)
    bytes_accessed = (n_pad * n_pad            # int8 A stream (dominant)
                      + 4 * n_pad * c          # hcol in + hcol out (bf16)
                      + 8 * n_pad * c_out      # acc / h0 / out traffic
                      + 4 * c * c_out)
    cost = pl.CostEstimate(flops=flops, transcendentals=0,
                           bytes_accessed=bytes_accessed)

    return pl.pallas_call(
        functools.partial(fused_hop_kernel, is_first=is_first, is_last=is_last),
        out_shape=out_shape,
        grid_spec=pltpu.PrefetchScalarGridSpec(
            num_scalar_prefetch=0,
            grid=grid,
            in_specs=in_specs,
            out_specs=out_specs),
        input_output_aliases=io_aliases,
        compiler_params=pltpu.CompilerParams(
            dimension_semantics=("parallel",),
            vmem_limit_bytes=vmem_limit),
        cost_estimate=cost,
    )(*inputs)


def _readout_mlp(x_flat, wm, bm, w1, b1, w2, b2, vmem_limit):
    g, sh = x_flat.shape
    hp = wm.shape[1]
    op = w2.shape[1]
    cost = pl.CostEstimate(
        flops=2 * g * (sh * hp + hp * hp + hp * op),
        transcendentals=0,
        bytes_accessed=(g * sh + sh * hp + hp * hp + hp * op) * 2 + g * op * 4)
    return pl.pallas_call(
        readout_mlp_kernel,
        out_shape=jax.ShapeDtypeStruct((g, op), jnp.float32),
        in_specs=[_VMEM_SPEC] * 7,
        out_specs=_VMEM_SPEC,
        compiler_params=pltpu.CompilerParams(vmem_limit_bytes=vmem_limit),
        cost_estimate=cost,
    )(x_flat, wm, bm, w1, b1, w2, b2)


# ---------------------------------------------------------------------------
# Model wrapper (padded parameters + glue in plain JAX)
# ---------------------------------------------------------------------------
class GNNModelPallas:
    def __init__(self, key, *, layers, in_features, hidden_features,
                 out_features, prop_depth, set_indice_length):
        assert prop_depth >= 1, "TAGConv needs prop_depth >= 1"
        self.n_layers = layers
        self.K = prop_depth
        self.hidden = hidden_features
        self.out_features = out_features
        self.set_indice_length = set_indice_length

        self.vmem_limit, self.tm_target = _tpu_budget()

        # Lane-aligned widths; zero padding is exact for the math (padded weight
        # rows/cols are zero; padded node rows become relu(bias) after layer 1,
        # harmless because their adjacency columns are zero and the readout only
        # gathers real node indices).
        self.cin_pad = _round_up(in_features, LANE)
        self.h_pad = _round_up(hidden_features, LANE)
        self.o_pad = _round_up(out_features, LANE)

        keys = jax.random.split(key, 2 * layers + 6)
        ki = iter(keys)

        def init(shape, k):
            return 0.1 * jax.random.normal(k, shape, dtype=jnp.float32)

        # TAGConv layers: per-hop weights [Cin_pad, Hpad] bf16, bias [1, Hpad] f32.
        self.conv_w = []
        self.conv_b = []
        c_in, c_in_pad = in_features, self.cin_pad
        for _ in range(layers):
            w = init((prop_depth + 1, c_in, hidden_features), next(ki))
            self.conv_w.append([
                _pad2(w[k], c_in_pad, self.h_pad).astype(jnp.bfloat16)
                for k in range(prop_depth + 1)])
            self.conv_b.append(_pad2(init((1, hidden_features), next(ki)),
                                     1, self.h_pad))
            c_in, c_in_pad = hidden_features, self.h_pad

        # Merger Linear(S*H, H), block-padded per set-index chunk so it matches
        # the flattened [G, S*Hpad] gather output.
        wm = init((set_indice_length * hidden_features, hidden_features), next(ki))
        wm = wm.reshape(set_indice_length, hidden_features, hidden_features)
        wm_pad = jnp.zeros((set_indice_length, self.h_pad, self.h_pad), jnp.float32)
        wm_pad = wm_pad.at[:, :hidden_features, :hidden_features].set(wm)
        self.merger_w = wm_pad.reshape(set_indice_length * self.h_pad,
                                       self.h_pad).astype(jnp.bfloat16)
        self.merger_b = _pad2(init((1, hidden_features), next(ki)), 1, self.h_pad)

        self.ff1_w = _pad2(init((hidden_features, hidden_features), next(ki)),
                           self.h_pad, self.h_pad).astype(jnp.bfloat16)
        self.ff1_b = _pad2(init((1, hidden_features), next(ki)), 1, self.h_pad)
        self.ff2_w = _pad2(init((hidden_features, out_features), next(ki)),
                           self.h_pad, self.o_pad).astype(jnp.bfloat16)
        self.ff2_b = _pad2(init((1, out_features), next(ki)), 1, self.o_pad)

    @staticmethod
    def _adjacency_int8(edge_index, n_pad):
        """Adjacency built directly in the streamed dtype (int8) + D^-1/2 (f32).

        0/1 (and small multi-edge counts) are exact in int8; the degree scaling
        stays in f32 and is applied inside the kernel.  No self-loops (PyG
        TAGConv calls gcn_norm with add_self_loops=False).  deg is the column
        (in-)degree, identical to the f32 reference for the symmetric /
        undirected edge lists used here.
        """
        row, col = edge_index[0], edge_index[1]
        a = jnp.zeros((n_pad, n_pad), jnp.int8).at[row, col].add(jnp.int8(1))
        deg = jnp.zeros((n_pad,), jnp.float32).at[col].add(1.0)
        dinv = jnp.where(deg > 0.0, 1.0 / jnp.sqrt(jnp.maximum(deg, 1.0)), 0.0)
        return a, dinv.reshape(n_pad, 1)

    def __call__(self, x, edge_index, batch_idx, set_indice, num_graphs):
        n = x.shape[0]
        # Row tile: generation target, shrunk so the row grid has >= 2 tiles
        # whenever possible (feeds both TensorCores on v7x); n padded so tm | n_pad.
        n_pad = _round_up(n, LANE)
        tm = self.tm_target
        while tm > LANE and n_pad < 2 * tm:
            tm //= 2
        n_pad = _round_up(n_pad, tm)

        a_bin, dinv = self._adjacency_int8(edge_index, n_pad)

        # TAGConv stack: per hop, ONE fused pallas_call streams the int8 A row
        # tile, produces hop_k, and immediately accumulates hop_k @ W_k (plus
        # hop_0 @ W_0 on the first hop and bias + ReLU on the last hop).
        h = _pad2(x.astype(jnp.float32), n_pad, self.cin_pad).astype(jnp.bfloat16)
        for w_hops, bias in zip(self.conv_w, self.conv_b):
            hcol = (h.astype(jnp.float32) * dinv).astype(jnp.bfloat16)
            acc = None
            for k in range(1, self.K + 1):
                first, last = k == 1, k == self.K
                res = _fused_hop(
                    a_bin, hcol, dinv, w_hops[k],
                    h0=h if first else None,
                    w0=w_hops[0] if first else None,
                    acc=None if first else acc,
                    b=bias if last else None,
                    is_first=first, is_last=last,
                    tm=tm, vmem_limit=self.vmem_limit)
                if last:
                    h = res
                else:
                    hcol, acc = res

        # get_mini_batch_embeddings (glue: per-graph offsets + gather + flatten).
        bi = None
        try:
            bi = np.asarray(batch_idx)
        except Exception:
            bi = None
        if bi is not None and bi.size > 1:
            assert (bi[:-1] <= bi[1:]).all(), \
                "batch_idx must be sorted (contiguous graphs, standard PyG batching)"
        counts = jnp.bincount(batch_idx, length=num_graphs)              # [G]
        index_bases = jnp.concatenate(
            [jnp.zeros((1,), counts.dtype), jnp.cumsum(counts)[:-1]])
        set_indice_batch = index_bases[:, None] + set_indice              # [G, S]
        gathered = h[set_indice_batch]                                    # [G, S, Hp]
        flat = gathered.reshape((num_graphs, -1))                         # [G, S*Hp]

        out_pad = _readout_mlp(flat, self.merger_w, self.merger_b,
                               self.ff1_w, self.ff1_b, self.ff2_w, self.ff2_b,
                               self.vmem_limit)
        return out_pad[:, :self.out_features]


# ---------------------------------------------------------------------------
if __name__ == "__main__":
    key = jax.random.PRNGKey(0)

    # Small synthetic graph batch: 2 graphs x 8 nodes (ring graphs).
    num_graphs = 2
    nodes_per_graph = 8
    N = num_graphs * nodes_per_graph
    in_features = 4
    hidden_features = 32
    out_features = 8
    prop_depth = 3          # exercises first / middle / last fused-hop variants
    n_layers = 2
    set_indice_length = 3

    k_x, k_model = jax.random.split(key)
    x = jax.random.normal(k_x, (N, in_features), dtype=jnp.float32)

    # Undirected ring edges within each graph.
    src, dst = [], []
    for g in range(num_graphs):
        base = g * nodes_per_graph
        for i in range(nodes_per_graph):
            u, v = base + i, base + (i + 1) % nodes_per_graph
            src += [u, v]
            dst += [v, u]
    edge_index = jnp.array([src, dst], dtype=jnp.int32)                  # [2, 32]

    batch_idx = jnp.repeat(jnp.arange(num_graphs, dtype=jnp.int32),
                           nodes_per_graph)                              # [16]
    set_indice = jnp.array([[0, 1, 2], [0, 1, 2]], dtype=jnp.int32)      # [2, 3]

    model = GNNModelPallas(
        k_model,
        layers=n_layers,
        in_features=in_features,
        hidden_features=hidden_features,
        out_features=out_features,
        prop_depth=prop_depth,
        set_indice_length=set_indice_length,
    )

    out = model(x, edge_index, batch_idx, set_indice, num_graphs)
    out = jax.block_until_ready(out)
    assert out.shape == (num_graphs, out_features)
    assert bool(jnp.all(jnp.isfinite(out)))
    print("KERNEL_OK")
</pallas_src>

<mosaic_0001>
module attributes {stable_mosaic.version = 11 : i64} {
  func.func @_copy(%arg0: i32, %arg1: memref<8x128xf32, #tpu.memory_space<vmem>>, %arg2: memref<8x128xf32, #tpu.memory_space<vmem>>) attributes {dimension_semantics = [#tpu.dimension_semantics<arbitrary>], iteration_bounds = array<i64: 2>, scalar_prefetch = 0 : i64, scratch_operands = 0 : i64, tpu.core_type = #tpu.core_type<tc>, window_params = [{pipeline_mode = #tpu.pipeline_mode<synchronous>, transform_indices = @transform_0, window_bounds = array<i64: 8, 128>}, {transform_indices = @transform_1, window_bounds = array<i64: 8, 128>}]} {
    %c0 = arith.constant 0 : index
    %c0_0 = arith.constant 0 : index
    %0 = vector.load %arg1[%c0, %c0_0] : memref<8x128xf32, #tpu.memory_space<vmem>>, vector<8x128xf32>
    %c0_1 = arith.constant 0 : index
    %c0_2 = arith.constant 0 : index
    %1 = vector.load %arg2[%c0_1, %c0_2] : memref<8x128xf32, #tpu.memory_space<vmem>>, vector<8x128xf32>
    tpu.vector_store %arg2[%c0_1, %c0_2], %0 {strides = array<i32>} : memref<8x128xf32, #tpu.memory_space<vmem>>, vector<8x128xf32>,
    return
  }
  func.func @transform_0(%arg0: i32) -> (i32, i32) {
    %c0_i32 = arith.constant 0 : i32
    %c0_i32_0 = arith.constant 0 : i32
    %c0_i32_1 = arith.constant 0 : i32
    return %c0_i32, %c0_i32_0 : i32, i32
  }
  func.func @transform_1(%arg0: i32) -> (i32, i32) {
    %c0_i32 = arith.constant 0 : i32
    %c0_i32_0 = arith.constant 0 : i32
    return %arg0, %c0_i32 : i32, i32
  }
}

module attributes {stable_mosaic.version = 11 : i64} {
  func.func @fused_hop_kernel(%arg0: i32, %arg1: memref<128x128xi8, #tpu.memory_space<vmem>>, %arg2: memref<128x128xbf16, #tpu.memory_space<vmem>>, %arg3: memref<128x1xf32, #tpu.memory_space<vmem>>, %arg4: memref<128x128xbf16, #tpu.memory_space<vmem>>, %arg5: memref<128x128xbf16, #tpu.memory_space<vmem>>, %arg6: memref<128x128xbf16, #tpu.memory_space<vmem>>, %arg7: memref<128x128xbf16, #tpu.memory_space<vmem>>, %arg8: memref<128x128xf32, #tpu.memory_space<vmem>>) attributes {dimension_semantics = [#tpu.dimension_semantics<parallel>], iteration_bounds = array<i64: 1>, scalar_prefetch = 0 : i64, scratch_operands = 0 : i64, tpu.core_type = #tpu.core_type<tc>, window_params = [{transform_indices = @transform_0, window_bounds = array<i64: 128, 128>}, {pipeline_mode = #tpu.pipeline_mode<synchronous>, transform_indices = @transform_1, window_bounds = array<i64: 128, 128>}, {transform_indices = @transform_2, window_bounds = array<i64: 128, 1>}, {transform_indices = @transform_3, window_bounds = array<i64: 128, 128>}, {pipeline_mode = #tpu.pipeline_mode<synchronous>, transform_indices = @transform_4, window_bounds = array<i64: 128, 128>}, {pipeline_mode = #tpu.pipeline_mode<synchronous>, transform_indices = @transform_5, window_bounds = array<i64: 128, 128>}, {transform_indices = @transform_6, window_bounds = array<i64: 128, 128>}, {transform_indices = @transform_7, window_bounds = array<i64: 128, 128>}]} {
    %c0 = arith.constant 0 : index
    %c0_0 = arith.constant 0 : index
    %0 = vector.load %arg1[%c0, %c0_0] : memref<128x128xi8, #tpu.memory_space<vmem>>, vector<128x128xi8>
    %1 = arith.sitofp %0 : vector<128x128xi8> to vector<128x128xbf16>
    %c0_1 = arith.constant 0 : index
    %c0_2 = arith.constant 0 : index
    %2 = vector.load %arg2[%c0_1, %c0_2] : memref<128x128xbf16, #tpu.memory_space<vmem>>, vector<128x128xbf16>
    %cst = arith.constant dense<0.000000e+00> : vector<128x128xf32>
    %3 = tpu.matmul %1, %2, %cst {dimension_numbers = #tpu.dot_dimension_numbers<[1], [0], [0], [1], [0, 0, 1, 1], [], []>} : vector<128x128xbf16>, vector<128x128xbf16>, vector<128x128xf32> -> vector<128x128xf32>
    %c0_3 = arith.constant 0 : index
    %c0_4 = arith.constant 0 : index
    %4 = vector.load %arg3[%c0_3, %c0_4] : memref<128x1xf32, #tpu.memory_space<vmem>>, vector<128x1xf32>
    %5 = vector.broadcast %4 : vector<128x1xf32> to vector<128x128xf32>
    %6 = arith.mulf %5, %3 : vector<128x128xf32>
    %7 = arith.truncf %6 : vector<128x128xf32> to vector<128x128xbf16>
    %c0_5 = arith.constant 0 : index
    %c0_6 = arith.constant 0 : index
    %8 = vector.load %arg6[%c0_5, %c0_6] : memref<128x128xbf16, #tpu.memory_space<vmem>>, vector<128x128xbf16>
    %cst_7 = arith.constant dense<0.000000e+00> : vector<128x128xf32>
    %9 = tpu.matmul %7, %8, %cst_7 {dimension_numbers = #tpu.dot_dimension_numbers<[1], [0], [0], [1], [0, 0, 1, 1], [], []>} : vector<128x128xbf16>, vector<128x128xbf16>, vector<128x128xf32> -> vector<128x128xf32>
    %c0_8 = arith.constant 0 : index
    %c0_9 = arith.constant 0 : index
    %10 = vector.load %arg4[%c0_8, %c0_9] : memref<128x128xbf16, #tpu.memory_space<vmem>>, vector<128x128xbf16>
    %c0_10 = arith.constant 0 : index
    %c0_11 = arith.constant 0 : index
    %11 = vector.load %arg5[%c0_10, %c0_11] : memref<128x128xbf16, #tpu.memory_space<vmem>>, vector<128x128xbf16>
    %cst_12 = arith.constant dense<0.000000e+00> : vector<128x128xf32>
    %12 = tpu.matmul %10, %11, %cst_12 {dimension_numbers = #tpu.dot_dimension_numbers<[1], [0], [0], [1], [0, 0, 1, 1], [], []>} : vector<128x128xbf16>, vector<128x128xbf16>, vector<128x128xf32> -> vector<128x128xf32>
    %13 = arith.addf %9, %12 : vector<128x128xf32>
    %14 = vector.broadcast %4 : vector<128x1xf32> to vector<128x128xf32>
    %15 = arith.mulf %14, %6 : vector<128x128xf32>
    %16 = arith.truncf %15 : vector<128x128xf32> to vector<128x128xbf16>
    %c0_13 = arith.constant 0 : index
    %c0_14 = arith.constant 0 : index
    %17 = vector.load %arg7[%c0_13, %c0_14] : memref<128x128xbf16, #tpu.memory_space<vmem>>, vector<128x128xbf16>
    tpu.vector_store %arg7[%c0_13, %c0_14], %16 {strides = array<i32>} : memref<128x128xbf16, #tpu.memory_space<vmem>>, vector<128x128xbf16>,
    %c0_15 = arith.constant 0 : index
    %c0_16 = arith.constant 0 : index
    %18 = vector.load %arg8[%c0_15, %c0_16] : memref<128x128xf32, #tpu.memory_space<vmem>>, vector<128x128xf32>
    tpu.vector_store %arg8[%c0_15, %c0_16], %13 {strides = array<i32>} : memref<128x128xf32, #tpu.memory_space<vmem>>, vector<128x128xf32>,
    return
  }
  func.func @transform_0(%arg0: i32) -> (i32, i32) {
    %c0_i32 = arith.constant 0 : i32
    %c0_i32_0 = arith.constant 0 : i32
    return %arg0, %c0_i32 : i32, i32
  }
  func.func @transform_1(%arg0: i32) -> (i32, i32) {
    %c0_i32 = arith.constant 0 : i32
    %c0_i32_0 = arith.constant 0 : i32
    %c0_i32_1 = arith.constant 0 : i32
    return %c0_i32, %c0_i32_0 : i32, i32
  }
  func.func @transform_2(%arg0: i32) -> (i32, i32) {
    %c0_i32 = arith.constant 0 : i32
    %c0_i32_0 = arith.constant 0 : i32
    return %arg0, %c0_i32 : i32, i32
  }
  func.func @transform_3(%arg0: i32) -> (i32, i32) {
    %c0_i32 = arith.constant 0 : i32
    %c0_i32_0 = arith.constant 0 : i32
    return %arg0, %c0_i32 : i32, i32
  }
  func.func @transform_4(%arg0: i32) -> (i32, i32) {
    %c0_i32 = arith.constant 0 : i32
    %c0_i32_0 = arith.constant 0 : i32
    %c0_i32_1 = arith.constant 0 : i32
    return %c0_i32, %c0_i32_0 : i32, i32
  }
  func.func @transform_5(%arg0: i32) -> (i32, i32) {
    %c0_i32 = arith.constant 0 : i32
    %c0_i32_0 = arith.constant 0 : i32
    %c0_i32_1 = arith.constant 0 : i32
    return %c0_i32, %c0_i32_0 : i32, i32
  }
  func.func @transform_6(%arg0: i32) -> (i32, i32) {
    %c0_i32 = arith.constant 0 : i32
    %c0_i32_0 = arith.constant 0 : i32
    return %arg0, %c0_i32 : i32, i32
  }
  func.func @transform_7(%arg0: i32) -> (i32, i32) {
    %c0_i32 = arith.constant 0 : i32
    %c0_i32_0 = arith.constant 0 : i32
    return %arg0, %c0_i32 : i32, i32
  }
}

</mosaic_0001>

<bundles_post_ra>
// kernel: tpu_custom_call.1
= control target key start
LH: loop header
LB: loop body
LE: loop exit
PB: predicated region body
PF: predicated region fallthrough
CT: control target
= control target key end

     0   :  { %6 = vsyncpa [#allocation3], 0  ;;  %s453_s0 = inlined_call_operand.hbm [shape: f32[8,128], index: 0, kind: input, shape index: {}]   ;;  %s454_s1 = inlined_call_operand.hbm [shape: f32[16,128], index: 1, kind: output, shape index: {}]  }
   0x1   :  { %7 = vsyncpa [#allocation4], 0 }
   0x2   :  { %9 = vsyncpa [#allocation4 + $0x1], 0  ;;  %s347_s6 = smov 0   ;;  %s349_s7 = smov 0  }
   0x3   :  { %s351_s8 = smov 0   ;;  %s353_s9 = smov 0  }
   0x4 LB: > { %s368_s10 = sadd.s32 4294967295, %s333_s9   ;;  %s183_s11 = sadd.s32 4294967294, %s333_s9   ;;  %s333_s9 = sphi %s353_s9, %s462_s9   ;;  %s329_s8 = sphi %s351_s8, %s461_s8   ;;  %s325_s7 = sphi %s349_s7, %s460_s7   ;;  %s321_s6 = sphi %s347_s6, %s459_s6  }
   0x5   : > { %s372_s12 = sadd.s32 1, %s333_s9   ;;  %s43_s13 = sadd.s32 1, %s329_s8 }
   0x6   : > { %s40_s14 = ssub.s32 %s333_s9, %s372_s12  ;;  %p53_p0 = scmp.ne.s32.totalorder %s329_s8, %s325_s7 }
   0x7   : > { %p41_p1 = scmp.eq.s32.totalorder %s40_s14, 0  ;;  %p54_p2 = scmp.eq.s32.totalorder %s368_s10, 1 }
   0x8   : > { %p59_p3 = scmp.ne.s32.totalorder %s325_s7, %s321_s6  ;;  %p60_p4 = scmp.eq.s32.totalorder %s183_s11, 1 }
   0x9   : > { %s383_s15 = scalar_select %p41_p1, %s329_s8, %s43_s13  }
   0xa   : > { %p385_p5 = por %p54_p2, %p53_p0  ;;  %p389_p6 = por %p60_p4, %p59_p3 }
   0xb   : > { %p184_p7 = scmp.ge.s32.totalorder %s333_s9, 1  ;;  %p67_p8 = scmp.lt.s32.totalorder %s333_s9, 3 }
   0xc   : > { %s456_s17 = scalar_select %p389_p6, 1, 0 }
   0xd   : > { %p207_p9 = scmp.eq.s32.totalorder %s368_s10, 0  ;;  %p396_p10 = pnand %p184_p7, %p67_p8 }
   0xe   : > { %s335_s19 = smov [#allocation2]  }
   0xf   : > { %s80_s20 = sshll.u32 %s335_s19, 4  ;;  %p199_p11 = pneg %p396_p10  ;;  %s81_s20 = int_to_ptr.vmem [resolvable:$true] %s80_s20 }
  0x10   : > { %s254_s21 = scalar_lea.vmem %s81_s20, 128  ;;  %p262_p3 = scmp.lt.s32.totalorder %s81_s20, %s81_s20 }
  0x11   : > { %p200_p12 = pnand %p207_p9, %p199_p11  ;;  %p255_p0 = scmp.ne.s32.totalorder %s81_s20, %s254_s21 }
  0x12   : > { %p263_p4 = scmp.lt.s32.totalorder %s254_s21, %s254_s21 }
  0x13   : > { %p245_p13 = pneg %p200_p12 }
  0x14   : > { %p264_p6 = por %p263_p4, %p262_p3 }
  0x15   : > { %p257_p1 = pnand %p255_p0, %p245_p13 }
  0x17   : > { %p258_p2 = pneg %p257_p1 }
  0x19   : > { %p265_p7 = pnand %p264_p6, %p258_p2 }
  0x1b   : > { %268 = shalt.err (!%p265_p7)
}
  0x1c   : > { %202 = dma.hbm_to_vmem [thread:$0]  (!%p200_p12), %s453_s0, 128, %s81_s20, [#allocation3]  }
  0x1d   : > { %93 = sbr.rel (%p396_p10) target bundleno = 60 (0x3c), region = 24 }
  0x22   : > { %312 = dma.done.wait (%p207_p9), [#allocation3], 128  }
  0x23   : > { %314 = vsyncadd (%p207_p9), [#allocation3], 4294967168  ;;  %s105_s24 = sand.u32 1, %s325_s7   ;;  %s190_s28 = sshll.u32 %s368_s10, 7  ;;  %v108_v0 = vld [vmem:[#allocation2] sm:$0xff] }
  0x24   : > { %s188_s25 = sshll.u32 %s105_s24, 3  ;;  %s122_s2 = scalar_lea.hbm %s454_s1, %s190_s28 }
  0x25   : > { %s107_s26 = scalar_lea.vmem [#allocation5], %s188_s25  ;;  %s111_s3 = scalar_lea.sflag [#allocation4], %s105_s24 }
  0x26   : > { %s124_s27 = sshll.u32 %s107_s26, 4  ;;  %109 = vst [vmem:[%s107_s26] sm:$0xff] %v108_v0  ;;  %s336_s5 = smov [#allocation5]   ;;  %s415_s27 = int_to_ptr.vmem [resolvable:$true] %s124_s27 }
  0x27   : > { %s269_s4 = scalar_lea.vmem %s415_s27, 128  ;;  %s273_s11 = sshll.u32 %s336_s5, 4  ;;  %s274_s11 = int_to_ptr.vmem [resolvable:$false] %s273_s11 }
  0x28   : > { %p270_p6 = scmp.ne.s32.totalorder %s415_s27, %s269_s4  ;;  %s275_s10 = scalar_lea.vmem %s274_s11, 256 }
  0x29   : > { %p276_p10 = scmp.lt.s32.totalorder %s415_s27, %s274_s11  ;;  %p277_p11 = scmp.lt.s32.totalorder %s275_s10, %s269_s4 }
  0x2a   : > { %p271_p8 = pnand %p270_p6, %p385_p5 }
  0x2b   : > { %p278_p12 = por %p277_p11, %p276_p10 }
  0x2c   : > { %p272_p9 = pneg %p271_p8 }
  0x2e   : > { %p279_p13 = pnand %p278_p12, %p272_p9 }
  0x30   : > { %282 = shalt.err (!%p279_p13)
}
  0x31   : > { %s283_s13 = scalar_lea.hbm %s122_s2, 128  ;;  %s287_s19 = scalar_lea.hbm %s454_s1, 256 }
  0x32   : > { %p284_p0 = scmp.ne.s32.totalorder %s122_s2, %s283_s13  ;;  %p288_p3 = scmp.lt.s32.totalorder %s122_s2, %s454_s1 }
  0x33   : > { %p289_p4 = scmp.lt.s32.totalorder %s287_s19, %s283_s13 }
  0x34   : > { %p285_p1 = pnand %p284_p0, %p385_p5 }
  0x35   : > { %p290_p7 = por %p289_p4, %p288_p3 }
  0x36   : > { %p286_p2 = pneg %p285_p1 }
  0x38   : > { %p291_p6 = pnand %p290_p7, %p286_p2 }
  0x3a   : > { %294 = shalt.err (!%p291_p6)
}
  0x3b   : > { %197 = dma.vmem_to_hbm [thread:$0]  (%p385_p5), %s415_s27, 128, %s122_s2, %s111_s3  }
  0x3c PF: > { %p209_p8 = scmp.ge.s32.totalorder %s333_s9, 2  ;;  %s136_s22 = sand.u32 1, %s321_s6  }
  0x3d   : > { %p458_p9 = scmp.ne.s32.totalorder %s456_s17, 0  ;;  %s137_s23 = scalar_lea.sflag [#allocation4], %s136_s22 }
  0x3f   : > { %p204_p10 = pnand %p209_p8, %p458_p9 }
  0x41   : > { %p205_p11 = pneg %p204_p10 }
  0x43   : > { %316 = dma.done.wait (%p205_p11), %s137_s23, 128  }
  0x44   : > { %318 = vsyncadd (%p205_p11), %s137_s23, 4294967168  ;;  %p12_p12 = scmp.ge.s32.totalorder %s372_s12, 4   ;;  %s459_s6 = smov %s325_s7 }
  0x45   : > { %s460_s7 = smov %s329_s8  ;;  %s461_s8 = smov %s383_s15 }
  0x46   : > { %s462_s9 = smov %s372_s12  ;;  %14 = sbr.rel (!%p12_p12) target bundleno = 4 (0x4), region = 61 }
  0x4b   :  { %142 = vsyncpa [#allocation3], 1 }
  0x4c   :  { %144 = vsyncpa [#allocation3 + $0x1], 1 }
  0x4d   :  { %145 = vsyncpa [#allocation4], 1 }
  0x4e   :  { %147 = vsyncpa [#allocation4 + $0x1], 1 }

// kernel: tpu_custom_call.1
= control target key start
LH: loop header
LB: loop body
LE: loop exit
PB: predicated region body
PF: predicated region fallthrough
CT: control target
= control target key end

     0   :  { %13 = vsyncpa [#allocation3], 0  ;;  %s1513_s0 = inlined_call_operand.hbm [shape: s8[128,128], index: 0, kind: input, shape index: {}]   ;;  %s1514_s1 = inlined_call_operand.vmem [shape: bf16[128,128], index: 1, kind: input, shape index: {}]   ;;  %s1515_s2 = inlined_call_operand.vmem [shape: f32[128,1], index: 2, kind: input, shape index: {}]   ;;  %s1516_s3 = inlined_call_operand.vmem [shape: bf16[128,128], index: 3, kind: input, shape index: {}]   ;;  %s1517_s4 = inlined_call_operand.hbm [shape: bf16[128,128], index: 4, kind: input, shape index: {}]   ;;  %s1518_s5 = inlined_call_operand.hbm [shape: bf16[128,128], index: 5, kind: input, shape index: {}]   ;;  %s1519_s6 = inlined_call_operand.hbm [shape: bf16[128,128], index: 6, kind: output, shape index: {0}]   ;;  %s1520_s7 = inlined_call_operand.hbm [shape: f32[128,128], index: 7, kind: output, shape index: {1}]  }
   0x1   :  { %14 = vsyncpa [#allocation6], 0 }
   0x2   :  { %15 = vsyncpa [#allocation4], 0 }
   0x3   :  { %16 = vsyncpa [#allocation10], 0  ;;  %s1317_s24 = smov [#allocation5]  }
   0x4   :  { %s40_s25 = sshll.u32 %s1317_s24, 4  ;;  %s41_s25 = int_to_ptr.vmem [resolvable:$true] %s40_s25 }
   0x5   :  { %s1217_s26 = scalar_lea.vmem %s41_s25, 1024  ;;  %p1222_p1 = scmp.lt.s32.totalorder %s41_s25, %s41_s25 }
   0x6   :  { %p1218_p0 = scmp.ne.s32.totalorder %s41_s25, %s1217_s26  ;;  %p1223_p2 = scmp.lt.s32.totalorder %s1217_s26, %s1217_s26 }
   0x8   :  { %p1224_p3 = por %p1223_p2, %p1222_p1 }
   0xa   :  { %p1225_p4 = pnand %p1224_p3, %p1218_p0 }
   0xc   :  { %1228 = shalt.err (!%p1225_p4)
}
   0xd   :  { %s1318_s27 = smov 64   ;;  %s1319_s28 = smov 4  }
   0xe   :  { %46 = dma.hbm_to_vmem [thread:$0]  %s1517_s4, 1024, %s41_s25, [#allocation6], %s1318_s27, %s1318_s27, %s1319_s28  }
   0xf   :  { %s1320_s8 = smov [#allocation2]  }
  0x10   :  { %s22_s9 = sshll.u32 %s1320_s8, 4  ;;  %s23_s9 = int_to_ptr.vmem [resolvable:$true] %s22_s9 }
  0x11   :  { %s1237_s10 = scalar_lea.vmem %s23_s9, 512  ;;  %p1242_p6 = scmp.lt.s32.totalorder %s23_s9, %s23_s9 }
  0x12   :  { %p1238_p5 = scmp.ne.s32.totalorder %s23_s9, %s1237_s10  ;;  %p1243_p7 = scmp.lt.s32.totalorder %s1237_s10, %s1237_s10 }
  0x14   :  { %p1244_p8 = por %p1243_p7, %p1242_p6 }
  0x16   :  { %p1245_p9 = pnand %p1244_p8, %p1238_p5 }
  0x18   :  { %1248 = shalt.err (!%p1245_p9)
}
  0x19   :  { %s1321_s11 = smov 128   ;;  %s1322_s12 = smov 8  }
  0x1a   :  { %28 = dma.hbm_to_vmem [thread:$0]  %s1513_s0, 512, %s23_s9, [#allocation3], %s1321_s11, %s1321_s11, %s1322_s12  }
  0x1b   :  { %s1323_s4 = smov [#allocation7]  }
  0x1c   :  { %s52_s15 = sshll.u32 %s1323_s4, 4  ;;  %s53_s15 = int_to_ptr.vmem [resolvable:$true] %s52_s15 }
  0x1d   :  { %s1257_s16 = scalar_lea.vmem %s53_s15, 1024  ;;  %p1262_p11 = scmp.lt.s32.totalorder %s53_s15, %s53_s15 }
  0x1e   :  { %p1258_p10 = scmp.ne.s32.totalorder %s53_s15, %s1257_s16  ;;  %p1263_p12 = scmp.lt.s32.totalorder %s1257_s16, %s1257_s16 }
  0x20   :  { %p1264_p13 = por %p1263_p12, %p1262_p11 }
  0x22   :  { %p1265_p0 = pnand %p1264_p13, %p1258_p10 }
  0x24   :  { %1268 = shalt.err (!%p1265_p0)
}
  0x25   :  { %58 = dma.hbm_to_vmem [thread:$0]  %s1518_s5, 1024, %s53_s15, [#allocation6], %s1318_s27, %s1318_s27, %s1319_s28  }
  0x26   :  { %1309 = dma.done.wait [#allocation3], 512  }
  0x27   :  { %1310 = vsyncadd [#allocation3], 4294966784 }
  0x28   :  { %1311 = dma.done.wait [#allocation6], 2048  }
  0x29   :  { %1312 = vsyncadd [#allocation6], 4294965248  ;;  %v1324_v0 = vmov 0   ;;  %v1177_v1 = vld [vmem:[%s1514_s1 + $0x38] sm:$0xff]   ;;  %v1178_v2 = vld [vmem:[%s1514_s1 + $0x30] sm:$0xff]  }
  0x2a   :  { %1176 = vset.pattern.permute.xlu1 %v1324_v0  ;;  %1175 = vset.pattern.permute.xlu0 %v1324_v0  ;;  %v1179_v3 = vld [vmem:[%s1514_s1 + $0x28] sm:$0xff]   ;;  %v1180_v4 = vld [vmem:[%s1514_s1 + $0x20] sm:$0xff]   ;;  %v1181_v11 = vld [vmem:[%s1514_s1 + $0x18] sm:$0xff]  }
  0x2b   :  { %1053 = vmatprep.subr.bf16.mxu0 %v1177_v1  ;;  %v1397_v5 = vld [vmem:[#allocation2] sm:$0xff]  ;;  %v251_v9 = vld [vmem:[%s1515_s2 + $0x48] sm:$0xff]  ;;  %v1182_v12 = vld [vmem:[%s1514_s1 + $0x10] sm:$0xff]  }
  0x2c   :  { %1054 = vmatpush3.bf16.msra.mxu0 %v1177_v1  ;;  %v73_v6 = vunpack.c.l.s8.bf16 %v1397_v5  ;;  %v250_v7 = vld [vmem:[%s1515_s2 + $0x40] sm:$0xff]  ;;  %v243_v10 = vld [vmem:[%s1515_s2 + $0x8] sm:$0xff]  ;;  %v245_v13 = vld [vmem:[%s1515_s2 + $0x18] sm:$0xff]  ;;  %v74_v32 = vunpack.c.h.s8.bf16 %v1397_v5 }
  0x2d   :  { %1055 = vmatprep.subr.bf16.mxu0 %v1178_v2  ;;  %v242_v8 = vld [vmem:[%s1515_s2] sm:$0xff]  ;;  %300 = vperm.xlu1 %1176, %v250_v7   ;;  %v244_v14 = vld [vmem:[%s1515_s2 + $0x10] sm:$0xff]  ;;  %v1185_v15 = vld [vmem:[#allocation5 + $0x38] sm:$0xff]  }
  0x2e   :  { %260 = vperm.xlu0 %1175, %v242_v8   ;;  %1069 = vmatprep.mubr.bf16.mxu0 %v73_v6  ;;  %v1186_v16 = vld [vmem:[#allocation5 + $0x30] sm:$0xff]   ;;  %v1183_v17 = vld [vmem:[%s1514_s1 + $0x8] sm:$0xff]   ;;  %v253_v18 = vld [vmem:[%s1515_s2 + $0x58] sm:$0xff] }
  0x2f   :  { %1085 = vmatprep.subr.bf16.mxu1 %v1185_v15  ;;  %v252_v19 = vld [vmem:[%s1515_s2 + $0x50] sm:$0xff]  ;;  %v1187_v20 = vld [vmem:[#allocation5 + $0x28] sm:$0xff]   ;;  %v1184_v21 = vld [vmem:[%s1514_s1] sm:$0xff]  }
  0x30   :  { %1056 = vmatpush3.bf16.msra.mxu0 %v1178_v2  ;;  %1086 = vmatpush3.bf16.msra.mxu1 %v1185_v15  ;;  %v247_v22 = vld [vmem:[%s1515_s2 + $0x28] sm:$0xff]  ;;  %v246_v23 = vld [vmem:[%s1515_s2 + $0x20] sm:$0xff]  ;;  %v1189_v29 = vld [vmem:[#allocation5 + $0x18] sm:$0xff]  }
  0x31   :  { %1057 = vmatprep.subr.bf16.mxu0 %v1179_v3  ;;  %305 = vperm.xlu1 %1176, %v251_v9   ;;  %v1188_v24 = vld [vmem:[#allocation5 + $0x20] sm:$0xff]   ;;  %v255_v25 = vld [vmem:[%s1515_s2 + $0x68] sm:$0xff]  ;;  %v1191_v30 = vld [vmem:[#allocation7 + $0x38] sm:$0xff]  }
  0x32   :  { %265 = vperm.xlu0 %1175, %v243_v10   ;;  %1087 = vmatprep.subr.bf16.mxu1 %v1186_v16  ;;  %v254_v26 = vld [vmem:[%s1515_s2 + $0x60] sm:$0xff]  ;;  %v70_v27 = vld [vmem:[#allocation2 + $0x8] sm:$0xff]  ;;  %v249_v31 = vld [vmem:[%s1515_s2 + $0x38] sm:$0xff] }
  0x33   :  { %v1196_v28 = vld [vmem:[%s1516_s3] sm:$0xff]   ;;  %v248_v33 = vld [vmem:[%s1515_s2 + $0x30] sm:$0xff]  ;;  %v75_v34 = vunpack.c.l.s8.bf16 %v70_v27  ;;  %v257_v37 = vld [vmem:[%s1515_s2 + $0x78] sm:$0xff]  ;;  %v76_v42 = vunpack.c.h.s8.bf16 %v70_v27 }
  0x34   :  { %1058 = vmatpush3.bf16.msra.mxu0 %v1179_v3  ;;  %1088 = vmatpush3.bf16.msra.mxu1 %v1186_v16  ;;  %v1190_v35 = vld [vmem:[#allocation5 + $0x10] sm:$0xff]   ;;  %v1192_v40 = vld [vmem:[#allocation5 + $0x8] sm:$0xff]   ;;  %v1194_v44 = vld [vmem:[#allocation5] sm:$0xff]  }
  0x35   :  { %1059 = vmatprep.subr.bf16.mxu0 %v1180_v4  ;;  %275 = vperm.xlu1 %1176, %v245_v13   ;;  %v1193_v36 = vld [vmem:[#allocation7 + $0x30] sm:$0xff]   ;;  %v1195_v41 = vld [vmem:[#allocation7 + $0x28] sm:$0xff]   ;;  %v1198_v45 = vld [vmem:[#allocation7 + $0x20] sm:$0xff]  }
  0x36   :  { %270 = vperm.xlu0 %1175, %v244_v14   ;;  %1089 = vmatprep.subr.bf16.mxu1 %v1187_v20  ;;  %v71_v38 = vld [vmem:[#allocation2 + $0x10] sm:$0xff]  ;;  %v72_v46 = vld [vmem:[#allocation2 + $0x18] sm:$0xff]  ;;  %v1197_v50 = vld [vmem:[%s1516_s3 + $0x8] sm:$0xff]  }
  0x37   :  { %1101 = vmatprep.mubr.bf16.mxu1 %v1196_v28  ;;  %v256_v39 = vld [vmem:[%s1515_s2 + $0x70] sm:$0xff]  ;;  %v77_v43 = vunpack.c.l.s8.bf16 %v71_v38  ;;  %v1199_v47 = vld [vmem:[#allocation7 + $0x18] sm:$0xff]   ;;  %v78_v48 = vunpack.c.h.s8.bf16 %v71_v38  ;;  %v79_v49 = vunpack.c.l.s8.bf16 %v72_v46  ;;  %v80_v52 = vunpack.c.h.s8.bf16 %v72_v46  ;;  %v1203_v55 = vld [vmem:[#allocation7 + $0x8] sm:$0xff]  }
  0x38   :  { %1060 = vmatpush3.bf16.msra.mxu0 %v1180_v4  ;;  %1090 = vmatpush3.bf16.msra.mxu1 %v1187_v20  ;;  %v1200_v51 = vld [vmem:[%s1516_s3 + $0x10] sm:$0xff]   ;;  %v1201_v53 = vld [vmem:[%s1516_s3 + $0x18] sm:$0xff]   ;;  %v1204_v56 = vld [vmem:[%s1516_s3 + $0x20] sm:$0xff]  }
  0x39   :  { %1061 = vmatprep.subr.bf16.mxu0 %v1181_v11  ;;  %315 = vperm.xlu1 %1176, %v253_v18   ;;  %v1202_v54 = vld [vmem:[#allocation7 + $0x10] sm:$0xff]   ;;  %v1205_v57 = vld [vmem:[%s1516_s3 + $0x28] sm:$0xff]   ;;  %v1206_v58 = vld [vmem:[#allocation7] sm:$0xff]  }
  0x3a   :  { %310 = vperm.xlu0 %1175, %v252_v19   ;;  %1091 = vmatprep.subr.bf16.mxu1 %v1188_v24  ;;  %v1207_v59 = vld [vmem:[%s1516_s3 + $0x30] sm:$0xff]   ;;  %v1208_v60 = vld [vmem:[%s1516_s3 + $0x38] sm:$0xff]   ;;  %s1325_s3 = smov [#allocation8]  }
  0x3b   :  { %s865_s4 = sshll.u32 %s1325_s3, 4  ;;  %s866_s4 = int_to_ptr.vmem [resolvable:$true] %s865_s4 }
  0x3c   :  { %1062 = vmatpush3.bf16.msra.mxu0 %v1181_v11  ;;  %1092 = vmatpush3.bf16.msra.mxu1 %v1188_v24  ;;  %s1269_s15 = scalar_lea.vmem %s866_s4, 1024  ;;  %p1274_p2 = scmp.lt.s32.totalorder %s866_s4, %s866_s4 }
  0x3d   :  { %1063 = vmatprep.subr.bf16.mxu0 %v1182_v12  ;;  %285 = vperm.xlu1 %1176, %v247_v22   ;;  %p1270_p1 = scmp.ne.s32.totalorder %s866_s4, %s1269_s15  ;;  %p1275_p3 = scmp.lt.s32.totalorder %s1269_s15, %s1269_s15 }
  0x3e   :  { %280 = vperm.xlu0 %1175, %v246_v23   ;;  %1093 = vmatprep.subr.bf16.mxu1 %v1189_v29 }
  0x3f   :  { %p1276_p4 = por %p1275_p3, %p1274_p2 }
  0x40   :  { %1064 = vmatpush3.bf16.msra.mxu0 %v1182_v12  ;;  %1094 = vmatpush3.bf16.msra.mxu1 %v1189_v29 }
  0x41   :  { %1065 = vmatprep.subr.bf16.mxu0 %v1183_v17  ;;  %325 = vperm.xlu1 %1176, %v255_v25   ;;  %p1277_p5 = pnand %p1276_p4, %p1270_p1 }
  0x42   :  { %320 = vperm.xlu0 %1175, %v254_v26   ;;  %1095 = vmatprep.subr.bf16.mxu1 %v1190_v35 }
  0x44   :  { %1066 = vmatpush3.bf16.msra.mxu0 %v1183_v17  ;;  %1096 = vmatpush3.bf16.msra.mxu1 %v1190_v35 }
  0x45   :  { %1067 = vmatprep.subr.bf16.mxu0 %v1184_v21  ;;  %295 = vperm.xlu1 %1176, %v249_v31  }
  0x46   :  { %290 = vperm.xlu0 %1175, %v248_v33   ;;  %1097 = vmatprep.subr.bf16.mxu1 %v1192_v40 }
  0x48   :  { %1068 = vmatpush3.bf16.msra.mxu0 %v1184_v21  ;;  %1098 = vmatpush3.bf16.msra.mxu1 %v1192_v40 }
  0x49   :  { %1117 = vmatprep.subr.bf16.mxu0 %v1191_v30  ;;  %335 = vperm.xlu1 %1176, %v257_v37  }
  0x4a   :  { %330 = vperm.xlu0 %1175, %v256_v39   ;;  %1099 = vmatprep.subr.bf16.mxu1 %v1194_v44 }
  0x4b   :  { %1070 = vmatmul.mubr.bf16.vlgmr.msra.gmra.mxu0 %v74_v32 }
  0x4c   :  { %1073 = vmatprep.mubr.bf16.mxu0 %v75_v34  ;;  %1118 = vmatpush3.bf16.msra.mxu0 %v1191_v30 }
  0x4d   :  { %1119 = vmatprep.subr.bf16.mxu0 %v1193_v36  ;;  %1100 = vmatpush3.bf16.msra.mxu1 %v1194_v44 }
  0x4e   :  { %1149 = vmatprep.subr.bf16.mxu1 %v1191_v30 }
  0x50   :  { %1120 = vmatpush3.bf16.msra.mxu0 %v1193_v36  ;;  %1102 = vmatmul.mubr.bf16.vlgmr.msra.gmra.mxu1 %v1197_v50 }
  0x51   :  { %1121 = vmatprep.subr.bf16.mxu0 %v1195_v41  ;;  %1157 = vmatpush3.bf16.msra.mxu1 %v1191_v30 }
  0x52   :  { %1105 = vmatprep.mubr.bf16.mxu1 %v1200_v51  ;;  %1150 = vmatprep.subr.bf16.mxu1 %v1193_v36 }
  0x53   :  { %1074 = vmatmul.mubr.bf16.gmra.mxu0 %v76_v42 }
  0x54   :  { %1077 = vmatprep.mubr.bf16.mxu0 %v77_v43  ;;  %1122 = vmatpush3.bf16.msra.mxu0 %v1195_v41 }
  0x55   :  { %1123 = vmatprep.subr.bf16.mxu0 %v1198_v45  ;;  %1158 = vmatpush3.bf16.msra.mxu1 %v1193_v36 }
  0x56   :  { %1151 = vmatprep.subr.bf16.mxu1 %v1195_v41 }
  0x58   :  { %1124 = vmatpush3.bf16.msra.mxu0 %v1198_v45  ;;  %1106 = vmatmul.mubr.bf16.gmra.mxu1 %v1201_v53 }
  0x59   :  { %1125 = vmatprep.subr.bf16.mxu0 %v1199_v47  ;;  %1159 = vmatpush3.bf16.msra.mxu1 %v1195_v41 }
  0x5a   :  { %1152 = vmatprep.subr.bf16.mxu1 %v1198_v45  ;;  %1109 = vmatprep.mubr.bf16.mxu1 %v1204_v56 }
  0x5b   :  { %1078 = vmatmul.mubr.bf16.gmra.mxu0 %v78_v48 }
  0x5c   :  { %1081 = vmatprep.mubr.bf16.mxu0 %v79_v49  ;;  %1126 = vmatpush3.bf16.msra.mxu0 %v1199_v47 }
  0x5d   :  { %1160 = vmatpush3.bf16.msra.mxu1 %v1198_v45  ;;  %1127 = vmatprep.subr.bf16.mxu0 %v1202_v54 }
  0x5e   :  { %1153 = vmatprep.subr.bf16.mxu1 %v1199_v47 }
  0x60   :  { %1128 = vmatpush3.bf16.msra.mxu0 %v1202_v54  ;;  %1110 = vmatmul.mubr.bf16.gmra.mxu1 %v1205_v57 }
  0x61   :  { %1161 = vmatpush3.bf16.msra.mxu1 %v1199_v47  ;;  %1129 = vmatprep.subr.bf16.mxu0 %v1203_v55 }
  0x62   :  { %1154 = vmatprep.subr.bf16.mxu1 %v1202_v54  ;;  %1113 = vmatprep.mubr.bf16.mxu1 %v1207_v59 }
  0x63   :  { %1082 = vmatmul.mubr.bf16.gmra.mxu0 %v80_v52 }
  0x64   :  { %1130 = vmatpush3.bf16.msra.mxu0 %v1203_v55 }
  0x65   :  { %1162 = vmatpush3.bf16.msra.mxu1 %v1202_v54  ;;  %1131 = vmatprep.subr.bf16.mxu0 %v1206_v58 }
  0x66   :  { %1155 = vmatprep.subr.bf16.mxu1 %v1203_v55 }
  0x68   :  { %1132 = vmatpush3.bf16.msra.mxu0 %v1206_v58  ;;  %1114 = vmatmul.mubr.bf16.gmra.mxu1 %v1208_v60 }
  0x69   :  { %1163 = vmatpush3.bf16.msra.mxu1 %v1203_v55 }
  0x6a   :  { %1156 = vmatprep.subr.bf16.mxu1 %v1206_v58 }
  0x6d   :  { %1164 = vmatpush3.bf16.msra.mxu1 %v1206_v58 }
  0xa8   :  { %v1485_v62 = vpop.permute.xlu1 %300 }
  0xa9   :  { %v261_v61 = vpop.permute.xlu0 %260 }
  0xac   :  { %v1487_v0 = vpop.permute.xlu1 %305 }
  0xad   :  { %v266_v63 = vpop.permute.xlu0 %265 }
  0xb0   :  { %v276_v2 = vpop.permute.xlu1 %275 }
  0xb1   :  { %v271_v1 = vpop.permute.xlu0 %270 }
  0xb4   :  { %v316_v4 = vpop.permute.xlu1 %315 }
  0xb5   :  { %v311_v3 = vpop.permute.xlu0 %310 }
  0xb8   :  { %v286_v6 = vpop.permute.xlu1 %285 }
  0xb9   :  { %v281_v5 = vpop.permute.xlu0 %280 }
  0xbc   :  { %v1491_v14 = vpop.permute.xlu1 %325 }
  0xbd   :  { %v1489_v10 = vpop.permute.xlu0 %320 }
  0xc0   :  { %v296_v29 = vpop.permute.xlu1 %295 }
  0xc1   :  { %v291_v24 = vpop.permute.xlu0 %290 }
  0xc5   :  { %v331_v58 = vpop.permute.xlu0 %330 }
 0x10b   :  { %v1071_v7 = vpop.f32.mrf.mxu0 }
 0x10c   :  { %v340_v9 = vmul.f32 %v1071_v7, %v271_v1 }
 0x10d   :  { %v179_v8 = vpop.f32.mrf.mxu0 }
 0x10e   :  { %v338_v12 = vmul.f32 %v261_v61, %v179_v8  ;;  %v750_v16 = vmul.f32 %v340_v9, %v271_v1  ;;  %v336_v1 = vpop.permute.xlu1 %335 }
 0x10f   :  { %v1072_v11 = vpop.f32.mrf.mxu0 }
 0x110   :  { %v341_v13 = vmul.f32 %v1072_v11, %v276_v2  ;;  %v748_v20 = vmul.f32 %v338_v12, %v261_v61 }
 0x111   :  { %v182_v15 = vpop.f32.mrf.mxu0 }
 0x112   :  { %v751_v17 = vmul.f32 %v341_v13, %v276_v2  ;;  %v339_v18 = vmul.f32 %v266_v63, %v182_v15  ;;  %v355_v25 = vpack.c.bf16 %v341_v13, %v340_v9 }
 0x113   :  { %v1075_v19 = vpop.f32.mrf.mxu0 }
 0x114   :  { %v966_v21 = vpack.c.bf16 %v751_v17, %v750_v16  ;;  %v354_v22 = vpack.c.bf16 %v339_v18, %v338_v12  ;;  %v749_v23 = vmul.f32 %v339_v18, %v266_v63  ;;  %v344_v28 = vmul.f32 %v1075_v19, %v291_v24 }
 0x115   :  { %v195_v26 = vpop.f32.mrf.mxu0 }
 0x116   :  { %998 = vst [vmem:[#allocation8 + $0x8] sm:$0xff] %v966_v21   ;;  %v961_v27 = vpack.c.bf16 %v749_v23, %v748_v20  ;;  %1133 = vmatprep.mubr.bf16.mxu0 %v354_v22  ;;  %v342_v31 = vmul.f32 %v281_v5, %v195_v26  ;;  %v754_v34 = vmul.f32 %v344_v28, %v291_v24 }
 0x117   :  { %v1076_v30 = vpop.f32.mrf.mxu0  ;;  %1134 = vmatmul.mubr.bf16.vlgmr.msra.gmra.mxu0 %v355_v25 }
 0x118   :  { %962 = vst [vmem:[#allocation8] sm:$0xff] %v961_v27   ;;  %v345_v32 = vmul.f32 %v1076_v30, %v296_v29  ;;  %v752_v38 = vmul.f32 %v342_v31, %v281_v5 }
 0x119   :  { %v198_v33 = vpop.f32.mrf.mxu0 }
 0x11a   :  { %v755_v35 = vmul.f32 %v345_v32, %v296_v29  ;;  %v343_v36 = vmul.f32 %v286_v6, %v198_v33  ;;  %v357_v42 = vpack.c.bf16 %v345_v32, %v344_v28 }
 0x11b   :  { %v1079_v37 = vpop.f32.mrf.mxu0 }
 0x11c   :  { %v976_v39 = vpack.c.bf16 %v755_v35, %v754_v34  ;;  %v356_v40 = vpack.c.bf16 %v343_v36, %v342_v31  ;;  %v753_v41 = vmul.f32 %v343_v36, %v286_v6  ;;  %v348_v45 = vmul.f32 %v1079_v37, %v311_v3 }
 0x11d   :  { %v211_v43 = vpop.f32.mrf.mxu0 }
 0x11e   :  { %1000 = vst [vmem:[#allocation8 + $0x18] sm:$0xff] %v976_v39   ;;  %v971_v44 = vpack.c.bf16 %v753_v41, %v752_v38  ;;  %1137 = vmatprep.mubr.bf16.mxu0 %v356_v40  ;;  %v346_v47 = vmul.f32 %v1485_v62, %v211_v43  ;;  %v758_v50 = vmul.f32 %v348_v45, %v311_v3 }
 0x11f   :  { %v1080_v46 = vpop.f32.mrf.mxu0  ;;  %1138 = vmatmul.mubr.bf16.gmra.mxu0 %v357_v42 }
 0x120   :  { %999 = vst [vmem:[#allocation8 + $0x10] sm:$0xff] %v971_v44   ;;  %v349_v48 = vmul.f32 %v1080_v46, %v316_v4  ;;  %v756_v54 = vmul.f32 %v346_v47, %v1485_v62 }
 0x121   :  { %v214_v49 = vpop.f32.mrf.mxu0 }
 0x122   :  { %v759_v51 = vmul.f32 %v349_v48, %v316_v4  ;;  %v347_v52 = vmul.f32 %v1487_v0, %v214_v49  ;;  %v359_v59 = vpack.c.bf16 %v349_v48, %v348_v45 }
 0x123   :  { %v1083_v53 = vpop.f32.mrf.mxu0 }
 0x124   :  { %v986_v55 = vpack.c.bf16 %v759_v51, %v758_v50  ;;  %v358_v56 = vpack.c.bf16 %v347_v52, %v346_v47  ;;  %v757_v57 = vmul.f32 %v347_v52, %v1487_v0  ;;  %v352_v63 = vmul.f32 %v1083_v53, %v331_v58 }
 0x125   :  { %v227_v60 = vpop.f32.mrf.mxu0 }
 0x126   :  { %1002 = vst [vmem:[#allocation8 + $0x28] sm:$0xff] %v986_v55   ;;  %v981_v61 = vpack.c.bf16 %v757_v57, %v756_v54  ;;  %1141 = vmatprep.mubr.bf16.mxu1 %v358_v56  ;;  %v350_v3 = vmul.f32 %v1489_v10, %v227_v60  ;;  %v762_v62 = vmul.f32 %v352_v63, %v331_v58 }
 0x127   :  { %v1084_v2 = vpop.f32.mrf.mxu0  ;;  %1142 = vmatmul.mubr.bf16.vlgmr.msra.gmra.mxu1 %v359_v59 }
 0x128   :  { %1001 = vst [vmem:[#allocation8 + $0x20] sm:$0xff] %v981_v61   ;;  %v353_v4 = vmul.f32 %v1084_v2, %v336_v1  ;;  %v760_v0 = vmul.f32 %v350_v3, %v1489_v10 }
 0x129   :  { %v230_v5 = vpop.f32.mrf.mxu0 }
 0x12a   :  { %v763_v6 = vmul.f32 %v353_v4, %v336_v1  ;;  %v351_v7 = vmul.f32 %v1491_v14, %v230_v5  ;;  %v361_v12 = vpack.c.bf16 %v353_v4, %v352_v63 }
 0x12c   :  { %v996_v8 = vpack.c.bf16 %v763_v6, %v762_v62  ;;  %v360_v9 = vpack.c.bf16 %v351_v7, %v350_v3  ;;  %v761_v11 = vmul.f32 %v351_v7, %v1491_v14 }
 0x12e   :  { %1004 = vst [vmem:[#allocation8 + $0x38] sm:$0xff] %v996_v8   ;;  %v991_v13 = vpack.c.bf16 %v761_v11, %v760_v0  ;;  %1145 = vmatprep.mubr.bf16.mxu1 %v360_v9 }
 0x12f   :  { %1146 = vmatmul.mubr.bf16.gmra.mxu1 %v361_v12 }
 0x130   :  { %1003 = vst [vmem:[#allocation8 + $0x30] sm:$0xff] %v991_v13  }
 0x131   :  { %1280 = shalt.err (!%p1277_p5)
}
 0x132   :  { %871 = dma.vmem_to_hbm [thread:$0]  %s866_s4, 1024, %s1519_s6, [#allocation4], %s1318_s27, %s1318_s27, %s1319_s28   ;;  %v1103_v10 = vpop.f32.mrf.mxu1 }
 0x133   :  { %s1326_s6 = smov [#allocation9]  }
 0x134   :  { %v540_v14 = vpop.f32.mrf.mxu1  ;;  %s877_s27 = sshll.u32 %s1326_s6, 4  ;;  %s878_s27 = int_to_ptr.vmem [resolvable:$true] %s877_s27 }
 0x135   :  { %s1289_s28 = scalar_lea.vmem %s878_s27, 2048  ;;  %p1294_p7 = scmp.lt.s32.totalorder %s878_s27, %s878_s27 }
 0x136   :  { %v1104_v15 = vpop.f32.mrf.mxu1  ;;  %p1290_p6 = scmp.ne.s32.totalorder %s878_s27, %s1289_s28  ;;  %p1295_p8 = scmp.lt.s32.totalorder %s1289_s28, %s1289_s28 }
 0x138   :  { %v543_v16 = vpop.f32.mrf.mxu1  ;;  %p1296_p9 = por %p1295_p8, %p1294_p7 }
 0x13a   :  { %v1107_v17 = vpop.f32.mrf.mxu1  ;;  %p1297_p10 = pnand %p1296_p9, %p1290_p6 }
 0x13c   :  { %v556_v18 = vpop.f32.mrf.mxu1 }
 0x13e   :  { %v1108_v19 = vpop.f32.mrf.mxu1 }
 0x140   :  { %v559_v20 = vpop.f32.mrf.mxu1 }
 0x142   :  { %v1111_v21 = vpop.f32.mrf.mxu1 }
 0x144   :  { %v572_v22 = vpop.f32.mrf.mxu1 }
 0x146   :  { %v1112_v23 = vpop.f32.mrf.mxu1 }
 0x148   :  { %v575_v24 = vpop.f32.mrf.mxu1 }
 0x14a   :  { %v1115_v27 = vpop.f32.mrf.mxu1 }
 0x14c   :  { %v588_v32 = vpop.f32.mrf.mxu1 }
 0x14e   :  { %v1116_v37 = vpop.f32.mrf.mxu1 }
 0x150   :  { %v591_v42 = vpop.f32.mrf.mxu1 }
 0x1d7   :  { %v1135_v25 = vpop.f32.mrf.mxu0 }
 0x1d8   :  { %v694_v26 = vadd.f32 %v1135_v25, %v1103_v10 }
 0x1d9   :  { %v685_v28 = vpop.f32.mrf.mxu0 }
 0x1da   :  { %846 = vst [vmem:[#allocation9 + $0x10] sm:$0xff] %v694_v26  ;;  %v686_v29 = vadd.f32 %v685_v28, %v540_v14 }
 0x1db   :  { %v1136_v30 = vpop.f32.mrf.mxu0 }
 0x1dc   :  { %844 = vst [vmem:[#allocation9] sm:$0xff] %v686_v29  ;;  %v697_v31 = vadd.f32 %v1136_v30, %v1104_v15 }
 0x1dd   :  { %v688_v33 = vpop.f32.mrf.mxu0 }
 0x1de   :  { %847 = vst [vmem:[#allocation9 + $0x18] sm:$0xff] %v697_v31  ;;  %v689_v34 = vadd.f32 %v688_v33, %v543_v16 }
 0x1df   :  { %v1139_v35 = vpop.f32.mrf.mxu0 }
 0x1e0   :  { %845 = vst [vmem:[#allocation9 + $0x8] sm:$0xff] %v689_v34  ;;  %v710_v36 = vadd.f32 %v1139_v35, %v1107_v17 }
 0x1e1   :  { %v701_v38 = vpop.f32.mrf.mxu0 }
 0x1e2   :  { %850 = vst [vmem:[#allocation9 + $0x30] sm:$0xff] %v710_v36  ;;  %v702_v39 = vadd.f32 %v701_v38, %v556_v18 }
 0x1e3   :  { %v1140_v40 = vpop.f32.mrf.mxu0 }
 0x1e4   :  { %848 = vst [vmem:[#allocation9 + $0x20] sm:$0xff] %v702_v39  ;;  %v713_v41 = vadd.f32 %v1140_v40, %v1108_v19 }
 0x1e5   :  { %v704_v43 = vpop.f32.mrf.mxu0 }
 0x1e6   :  { %851 = vst [vmem:[#allocation9 + $0x38] sm:$0xff] %v713_v41  ;;  %v705_v44 = vadd.f32 %v704_v43, %v559_v20 }
 0x1e7   :  { %v1143_v45 = vpop.f32.mrf.mxu1 }
 0x1e8   :  { %849 = vst [vmem:[#allocation9 + $0x28] sm:$0xff] %v705_v44  ;;  %v726_v46 = vadd.f32 %v1143_v45, %v1111_v21 }
 0x1e9   :  { %v717_v47 = vpop.f32.mrf.mxu1 }
 0x1ea   :  { %854 = vst [vmem:[#allocation9 + $0x50] sm:$0xff] %v726_v46  ;;  %v718_v48 = vadd.f32 %v717_v47, %v572_v22 }
 0x1eb   :  { %v1144_v49 = vpop.f32.mrf.mxu1 }
 0x1ec   :  { %852 = vst [vmem:[#allocation9 + $0x40] sm:$0xff] %v718_v48  ;;  %v729_v50 = vadd.f32 %v1144_v49, %v1112_v23 }
 0x1ed   :  { %v720_v51 = vpop.f32.mrf.mxu1 }
 0x1ee   :  { %855 = vst [vmem:[#allocation9 + $0x58] sm:$0xff] %v729_v50  ;;  %v721_v52 = vadd.f32 %v720_v51, %v575_v24 }
 0x1ef   :  { %v1147_v53 = vpop.f32.mrf.mxu1 }
 0x1f0   :  { %853 = vst [vmem:[#allocation9 + $0x48] sm:$0xff] %v721_v52  ;;  %v742_v54 = vadd.f32 %v1147_v53, %v1115_v27 }
 0x1f1   :  { %v733_v55 = vpop.f32.mrf.mxu1 }
 0x1f2   :  { %858 = vst [vmem:[#allocation9 + $0x70] sm:$0xff] %v742_v54  ;;  %v734_v56 = vadd.f32 %v733_v55, %v588_v32 }
 0x1f3   :  { %v1148_v57 = vpop.f32.mrf.mxu1 }
 0x1f4   :  { %856 = vst [vmem:[#allocation9 + $0x60] sm:$0xff] %v734_v56  ;;  %v745_v58 = vadd.f32 %v1148_v57, %v1116_v37 }
 0x1f5   :  { %v736_v59 = vpop.f32.mrf.mxu1 }
 0x1f6   :  { %859 = vst [vmem:[#allocation9 + $0x78] sm:$0xff] %v745_v58  ;;  %v737_v60 = vadd.f32 %v736_v59, %v591_v42 }
 0x1f8   :  { %857 = vst [vmem:[#allocation9 + $0x68] sm:$0xff] %v737_v60 }
 0x1f9   :  { %1300 = shalt.err (!%p1297_p10)
}
 0x1fa   :  { %883 = dma.vmem_to_hbm [thread:$0]  %s878_s27, 2048, %s1520_s7, [#allocation10], %s1321_s11, %s1321_s11, %s1322_s12  }
 0x1fb   :  { %1313 = dma.done.wait [#allocation4], 1024  }
 0x1fc   :  { %1314 = vsyncadd [#allocation4], 4294966272 }
 0x1fd   :  { %1315 = dma.done.wait [#allocation10], 2048  }
 0x1fe   :  { %1316 = vsyncadd [#allocation10], 4294965248 }
 0x1ff   :  { %890 = vsyncpa [#allocation3], 1 }
 0x200   :  { %891 = vsyncpa [#allocation6], 1 }
 0x201   :  { %892 = vsyncpa [#allocation4], 1 }
 0x202   :  { %893 = vsyncpa [#allocation10], 1 }

</bundles_post_ra>
